<compile_context>
chip_gen: v7x
topology: tpu7x:2x2x1
jax: 0.10.0
libtpu: 0.0.40
codegen_flags: <defaults>
</compile_context>

<pallas_src>
import numpy as np

import jax
import jax.numpy as jnp
from jax import lax
from jax.experimental import pallas as pl
from jax.experimental.pallas import tpu as pltpu


# ------------------------------- Pallas kernel -------------------------------


def _residual_block_kernel(x_ref, wt1_ref, b1_ref, wt2_ref, wtc_ref, bo_ref,
                           o_ref, xp_ref, ip_ref):
    """Fused residualBlock forward for one batch element.

    x_ref   : (1, H, W*Cin)      input image, channels-last rows
    wt1_ref : (3, W*Cin, W*C1)   conv1 row-Toeplitz weights (BN1 scale folded in)
    b1_ref  : (1, W*C1)          conv1 bias + BN1 shift, tiled over W
    wt2_ref : (3, W*C1, W*Cout)  conv2 row-Toeplitz weights (BN2 scale folded in)
    wtc_ref : (W*Cin, W*Cout)    1x1 cross-conv block-diagonal weights (BNc folded)
    bo_ref  : (1, W*Cout)        combined BN2+BNc shift (+ conv biases), tiled
    o_ref   : (1, H, W*Cout)     output
    xp_ref  : (H+2, W*Cin)       VMEM scratch: x with zero top/bottom halo rows
    ip_ref  : (H+2, W*C1)        VMEM scratch: inter with zero halo rows
    """
    H = x_ref.shape[1]

    # --- conv1 + BN1 + ReLU (Dropout(0.2) is identity in eval mode) ---------
    xp_ref[...] = jnp.zeros_like(xp_ref)             # halo rows stay zero
    xp_ref[1:H + 1, :] = x_ref[0]
    acc1 = jnp.dot(xp_ref[0:H, :], wt1_ref[0], preferred_element_type=jnp.float32)
    acc1 += jnp.dot(xp_ref[1:H + 1, :], wt1_ref[1], preferred_element_type=jnp.float32)
    acc1 += jnp.dot(xp_ref[2:H + 2, :], wt1_ref[2], preferred_element_type=jnp.float32)
    inter = jnp.maximum(acc1 + b1_ref[...], 0.0)     # (H, W*C1) in f32

    # --- conv2 + BN2  +  1x1 cross conv + BNc,  then ReLU -------------------
    ip_ref[...] = jnp.zeros_like(ip_ref)
    ip_ref[1:H + 1, :] = inter.astype(ip_ref.dtype)
    acc2 = jnp.dot(x_ref[0], wtc_ref[...], preferred_element_type=jnp.float32)
    acc2 += jnp.dot(ip_ref[0:H, :], wt2_ref[0], preferred_element_type=jnp.float32)
    acc2 += jnp.dot(ip_ref[1:H + 1, :], wt2_ref[1], preferred_element_type=jnp.float32)
    acc2 += jnp.dot(ip_ref[2:H + 2, :], wt2_ref[2], preferred_element_type=jnp.float32)
    o_ref[0] = jnp.maximum(acc2 + bo_ref[...], 0.0).astype(o_ref.dtype)


# ------------------------------ pallas_call glue -----------------------------


def residual_block_forward(x_nchw, params, *, use_bf16=False):
    """residualBlock forward (is_relu=True, in_ch != out_ch branch). NCHW in/out."""
    N, Cin, H, W = x_nchw.shape
    WC1 = params["b1"].shape[-1]
    WCout = params["bo"].shape[-1]
    Cout = WCout // W

    # bf16 matmul operands help on v6e/v7x (bf16-native MXU, half the DMA
    # bytes); accumulation, bias and ReLU stay f32.  Off by default so the
    # numerical check in __main__ can use a tight f32 tolerance.
    cdtype = jnp.bfloat16 if use_bf16 else jnp.float32

    x2d = jnp.transpose(x_nchw, (0, 2, 3, 1)).reshape(N, H, W * Cin).astype(cdtype)
    wt1 = params["wt1"].astype(cdtype)
    wt2 = params["wt2"].astype(cdtype)
    wtc = params["wtc"].astype(cdtype)

    # VMEM budget (per grid step, f32): weights ~1 MiB (constant index_map ->
    # fetched once), input/output blocks a few tens of KiB, scratches ~36 KiB.
    # Far below the default scoped limit at these shapes; for much larger H/W,
    # tile H in multiples of 8 (with a 1-row halo) or raise vmem_limit_bytes.
    out2d = pl.pallas_call(
        _residual_block_kernel,
        out_shape=jax.ShapeDtypeStruct((N, H, WCout), jnp.float32),
        grid=(N,),
        in_specs=[
            pl.BlockSpec((1, H, W * Cin), lambda n: (n, 0, 0)),
            pl.BlockSpec((3, W * Cin, WC1), lambda n: (0, 0, 0)),
            pl.BlockSpec((1, WC1), lambda n: (0, 0)),
            pl.BlockSpec((3, WC1, WCout), lambda n: (0, 0, 0)),
            pl.BlockSpec((W * Cin, WCout), lambda n: (0, 0)),
            pl.BlockSpec((1, WCout), lambda n: (0, 0)),
        ],
        out_specs=pl.BlockSpec((1, H, WCout), lambda n: (n, 0, 0)),
        scratch_shapes=[
            pltpu.VMEM((H + 2, W * Cin), cdtype),
            pltpu.VMEM((H + 2, WC1), cdtype),
        ],
        compiler_params=pltpu.CompilerParams(
            dimension_semantics=("parallel",)),   # batch across v7x's 2 TCs
    )(x2d, wt1, params["b1"], wt2, wtc, params["bo"])

    return out2d.reshape(N, H, W, Cout).transpose(0, 3, 1, 2)   # NHWC -> NCHW


# ------------------- host-side weight folding / construction -----------------


def _fold_bn(conv_bias, gamma, beta, mean, var, eps=1e-5):
    scale = gamma / jnp.sqrt(var + eps)
    shift = beta + (conv_bias - mean) * scale
    return scale.astype(jnp.float32), shift.astype(jnp.float32)


def _row_toeplitz_3x3(w_hwio, W):
    """(3,3,Cin,Cout) conv kernel -> (3, W*Cin, W*Cout) per-kernel-row weights.

    mats[ky][wi*Cin + c, wo*Cout + co] = w[ky, wi - wo + 1, c, co] for |wi-wo|<=1.
    Out-of-range wi is simply absent, which equals zero padding along W.
    """
    w = np.asarray(w_hwio, np.float32)
    _, KW, Cin, Cout = w.shape
    mats = np.zeros((3, W * Cin, W * Cout), np.float32)
    for ky in range(3):
        for wo in range(W):
            for kx in range(KW):
                wi = wo + kx - 1
                if 0 <= wi < W:
                    mats[ky, wi * Cin:(wi + 1) * Cin,
                         wo * Cout:(wo + 1) * Cout] = w[ky, kx]
    return jnp.asarray(mats)


def _block_diag_1x1(wc, W):
    """(Cin, Cout) 1x1 conv kernel -> (W*Cin, W*Cout) block-diagonal weights."""
    w = np.asarray(wc, np.float32)
    Cin, Cout = w.shape
    m = np.zeros((W * Cin, W * Cout), np.float32)
    for wo in range(W):
        m[wo * Cin:(wo + 1) * Cin, wo * Cout:(wo + 1) * Cout] = w
    return jnp.asarray(m)


def make_params(key, in_ch, first_ch, out_ch, W):
    ks = jax.random.split(key, 12)
    # conv weights in HWIO, 0.1 * N(0,1)
    w1_hwio = 0.1 * jax.random.normal(ks[0], (3, 3, in_ch, first_ch), jnp.float32)
    b1 = 0.1 * jax.random.normal(ks[1], (first_ch,), jnp.float32)
    w2_hwio = 0.1 * jax.random.normal(ks[2], (3, 3, first_ch, out_ch), jnp.float32)
    b2 = 0.1 * jax.random.normal(ks[3], (out_ch,), jnp.float32)
    wc_hwio = 0.1 * jax.random.normal(ks[4], (1, 1, in_ch, out_ch), jnp.float32)
    bc = 0.1 * jax.random.normal(ks[5], (out_ch,), jnp.float32)
    # BatchNorm (eval mode) params: (gamma, beta, running_mean, running_var)
    bn1 = (1.0 + 0.1 * jax.random.normal(ks[6], (first_ch,)),
           0.1 * jax.random.normal(ks[7], (first_ch,)),
           0.05 * jax.random.normal(ks[8], (first_ch,)),
           1.0 + 0.1 * jnp.abs(jax.random.normal(ks[9], (first_ch,))))
    bn2 = (1.0 + 0.05 * jnp.cos(jnp.arange(out_ch, dtype=jnp.float32)),
           0.05 * jnp.sin(jnp.arange(out_ch, dtype=jnp.float32)),
           0.02 * jnp.cos(jnp.arange(out_ch, dtype=jnp.float32)),
           1.0 + 0.1 * jnp.abs(jax.random.normal(ks[10], (out_ch,))))
    bnc = (1.0 + 0.05 * jnp.sin(jnp.arange(out_ch, dtype=jnp.float32)),
           0.05 * jnp.cos(jnp.arange(out_ch, dtype=jnp.float32)),
           0.02 * jnp.sin(jnp.arange(out_ch, dtype=jnp.float32)),
           1.0 + 0.1 * jnp.abs(jax.random.normal(ks[11], (out_ch,))))

    s1, sh1 = _fold_bn(b1, *bn1)
    s2, sh2 = _fold_bn(b2, *bn2)
    sc, shc = _fold_bn(bc, *bnc)

    params = {
        # BN scales folded into the Cout axis of the conv weights.
        "wt1": _row_toeplitz_3x3(w1_hwio * s1, W),
        "b1": jnp.tile(sh1, W).reshape(1, W * first_ch),
        "wt2": _row_toeplitz_3x3(w2_hwio * s2, W),
        "wtc": _block_diag_1x1(wc_hwio[0, 0] * sc, W),
        "bo": jnp.tile(sh2 + shc, W).reshape(1, W * out_ch),
    }
    raw = {"w1_hwio": w1_hwio, "b1": b1, "bn1": bn1,
           "w2_hwio": w2_hwio, "b2": b2, "bn2": bn2,
           "wc_hwio": wc_hwio, "bc": bc, "bnc": bnc}
    return params, raw


def reference_forward(x_nchw, raw, eps=1e-5):
    """Pure-JAX reference (lax.conv) matching the PyTorch eval-mode forward."""
    def bn(y, g, b, m, v):
        return (y - m) / jnp.sqrt(v + eps) * g + b

    x = jnp.transpose(x_nchw, (0, 2, 3, 1)).astype(jnp.float32)
    dn = ("NHWC", "HWIO", "NHWC")
    y1 = lax.conv_general_dilated(x, raw["w1_hwio"], (1, 1), "SAME",
                                  dimension_numbers=dn) + raw["b1"]
    y1 = jax.nn.relu(bn(y1, *raw["bn1"]))           # Dropout(0.2): identity (eval)
    y2 = lax.conv_general_dilated(y1, raw["w2_hwio"], (1, 1), "SAME",
                                  dimension_numbers=dn) + raw["b2"]
    y2 = bn(y2, *raw["bn2"])
    yc = lax.conv_general_dilated(x, raw["wc_hwio"], (1, 1), "SAME",
                                  dimension_numbers=dn) + raw["bc"]
    yc = bn(yc, *raw["bnc"])
    out = jax.nn.relu(y2 + yc)
    return jnp.transpose(out, (0, 3, 1, 2))


# ----------------------------------- main ------------------------------------


if __name__ == "__main__":
    # residualBlock(in_ch=4, first_ch=16, out_ch=16, is_relu=True)
    # in_ch != out_ch -> conv_cross path is exercised.
    N, in_ch, H, W = 2, 4, 16, 16
    first_ch, out_ch = 16, 16

    key = jax.random.PRNGKey(0)
    kx, kp = jax.random.split(key)
    x = jax.random.normal(kx, (N, in_ch, H, W), jnp.float32)   # PyTorch NCHW input

    params, raw = make_params(kp, in_ch, first_ch, out_ch, W)

    fwd = jax.jit(residual_block_forward, static_argnames=("use_bf16",))
    out = jax.block_until_ready(fwd(x, params))                # f32 path (default)

    ref = jax.block_until_ready(reference_forward(x, raw))
    assert out.shape == (N, out_ch, H, W)
    err = float(jnp.max(jnp.abs(out - ref)))
    assert jnp.allclose(out, ref, atol=2e-3, rtol=2e-3), f"max abs err {err}"

    print("KERNEL_OK")
</pallas_src>

<mosaic_0001>
module attributes {stable_mosaic.version = 11 : i64} {
  func.func @_residual_block_kernel(%arg0: i32, %arg1: memref<1x16x64xf32, #tpu.memory_space<vmem>>, %arg2: memref<3x64x256xf32, #tpu.memory_space<vmem>>, %arg3: memref<1x256xf32, #tpu.memory_space<vmem>>, %arg4: memref<3x256x256xf32, #tpu.memory_space<vmem>>, %arg5: memref<64x256xf32, #tpu.memory_space<vmem>>, %arg6: memref<1x256xf32, #tpu.memory_space<vmem>>, %arg7: memref<1x16x256xf32, #tpu.memory_space<vmem>>, %arg8: memref<18x64xf32, #tpu.memory_space<vmem>>, %arg9: memref<18x256xf32, #tpu.memory_space<vmem>>) attributes {dimension_semantics = [#tpu.dimension_semantics<parallel>], iteration_bounds = array<i64: 2>, scalar_prefetch = 0 : i64, scratch_operands = 2 : i64, tpu.core_type = #tpu.core_type<tc>, window_params = [{transform_indices = @transform_0, window_bounds = array<i64: 1, 16, 64>}, {pipeline_mode = #tpu.pipeline_mode<synchronous>, transform_indices = @transform_1, window_bounds = array<i64: 3, 64, 256>}, {pipeline_mode = #tpu.pipeline_mode<synchronous>, transform_indices = @transform_2, window_bounds = array<i64: 1, 256>}, {pipeline_mode = #tpu.pipeline_mode<synchronous>, transform_indices = @transform_3, window_bounds = array<i64: 3, 256, 256>}, {pipeline_mode = #tpu.pipeline_mode<synchronous>, transform_indices = @transform_4, window_bounds = array<i64: 64, 256>}, {pipeline_mode = #tpu.pipeline_mode<synchronous>, transform_indices = @transform_5, window_bounds = array<i64: 1, 256>}, {transform_indices = @transform_6, window_bounds = array<i64: 1, 16, 256>}]} {
    %cst = arith.constant 0.000000e+00 : f32
    %0 = vector.broadcast %cst : f32 to vector<18x64xf32>
    %c0 = arith.constant 0 : index
    %c0_0 = arith.constant 0 : index
    %1 = vector.load %arg8[%c0, %c0_0] : memref<18x64xf32, #tpu.memory_space<vmem>>, vector<18x64xf32>
    tpu.vector_store %arg8[%c0, %c0_0], %0 {strides = array<i32>} : memref<18x64xf32, #tpu.memory_space<vmem>>, vector<18x64xf32>,
    %c0_1 = arith.constant 0 : index
    %c0_2 = arith.constant 0 : index
    %c0_3 = arith.constant 0 : index
    %2 = vector.load %arg1[%c0_1, %c0_2, %c0_3] : memref<1x16x64xf32, #tpu.memory_space<vmem>>, vector<1x16x64xf32>
    %3 = vector.shape_cast %2 : vector<1x16x64xf32> to vector<16x64xf32>
    %c1 = arith.constant 1 : index
    %c0_4 = arith.constant 0 : index
    %4 = vector.load %arg8[%c1, %c0_4] : memref<18x64xf32, #tpu.memory_space<vmem>>, vector<16x64xf32>
    tpu.vector_store %arg8[%c1, %c0_4], %3 {strides = array<i32>} : memref<18x64xf32, #tpu.memory_space<vmem>>, vector<16x64xf32>,
    %c0_5 = arith.constant 0 : index
    %c0_6 = arith.constant 0 : index
    %5 = vector.load %arg8[%c0_5, %c0_6] : memref<18x64xf32, #tpu.memory_space<vmem>>, vector<16x64xf32>
    %c0_7 = arith.constant 0 : index
    %c0_8 = arith.constant 0 : index
    %c0_9 = arith.constant 0 : index
    %6 = vector.load %arg2[%c0_7, %c0_8, %c0_9] : memref<3x64x256xf32, #tpu.memory_space<vmem>>, vector<1x64x256xf32>
    %7 = vector.shape_cast %6 : vector<1x64x256xf32> to vector<64x256xf32>
    %cst_10 = arith.constant dense<0.000000e+00> : vector<16x256xf32>
    %8 = tpu.matmul %5, %7, %cst_10 {dimension_numbers = #tpu.dot_dimension_numbers<[1], [0], [0], [1], [0, 0, 1, 1], [], []>} : vector<16x64xf32>, vector<64x256xf32>, vector<16x256xf32> -> vector<16x256xf32>
    %c1_11 = arith.constant 1 : index
    %c0_12 = arith.constant 0 : index
    %9 = vector.load %arg8[%c1_11, %c0_12] : memref<18x64xf32, #tpu.memory_space<vmem>>, vector<16x64xf32>
    %c1_13 = arith.constant 1 : index
    %c0_14 = arith.constant 0 : index
    %c0_15 = arith.constant 0 : index
    %10 = vector.load %arg2[%c1_13, %c0_14, %c0_15] : memref<3x64x256xf32, #tpu.memory_space<vmem>>, vector<1x64x256xf32>
    %11 = vector.shape_cast %10 : vector<1x64x256xf32> to vector<64x256xf32>
    %cst_16 = arith.constant dense<0.000000e+00> : vector<16x256xf32>
    %12 = tpu.matmul %9, %11, %cst_16 {dimension_numbers = #tpu.dot_dimension_numbers<[1], [0], [0], [1], [0, 0, 1, 1], [], []>} : vector<16x64xf32>, vector<64x256xf32>, vector<16x256xf32> -> vector<16x256xf32>
    %13 = arith.addf %8, %12 : vector<16x256xf32>
    %c2 = arith.constant 2 : index
    %c0_17 = arith.constant 0 : index
    %14 = vector.load %arg8[%c2, %c0_17] : memref<18x64xf32, #tpu.memory_space<vmem>>, vector<16x64xf32>
    %c2_18 = arith.constant 2 : index
    %c0_19 = arith.constant 0 : index
    %c0_20 = arith.constant 0 : index
    %15 = vector.load %arg2[%c2_18, %c0_19, %c0_20] : memref<3x64x256xf32, #tpu.memory_space<vmem>>, vector<1x64x256xf32>
    %16 = vector.shape_cast %15 : vector<1x64x256xf32> to vector<64x256xf32>
    %cst_21 = arith.constant dense<0.000000e+00> : vector<16x256xf32>
    %17 = tpu.matmul %14, %16, %cst_21 {dimension_numbers = #tpu.dot_dimension_numbers<[1], [0], [0], [1], [0, 0, 1, 1], [], []>} : vector<16x64xf32>, vector<64x256xf32>, vector<16x256xf32> -> vector<16x256xf32>
    %18 = arith.addf %13, %17 : vector<16x256xf32>
    %c0_22 = arith.constant 0 : index
    %c0_23 = arith.constant 0 : index
    %19 = vector.load %arg3[%c0_22, %c0_23] : memref<1x256xf32, #tpu.memory_space<vmem>>, vector<1x256xf32>
    %20 = vector.broadcast %19 : vector<1x256xf32> to vector<16x256xf32>
    %21 = arith.addf %18, %20 : vector<16x256xf32>
    %cst_24 = arith.constant 0.000000e+00 : f32
    %22 = vector.broadcast %cst_24 : f32 to vector<16x256xf32>
    %23 = arith.maximumf %21, %22 : vector<16x256xf32>
    %cst_25 = arith.constant 0.000000e+00 : f32
    %24 = vector.broadcast %cst_25 : f32 to vector<18x256xf32>
    %c0_26 = arith.constant 0 : index
    %c0_27 = arith.constant 0 : index
    %25 = vector.load %arg9[%c0_26, %c0_27] : memref<18x256xf32, #tpu.memory_space<vmem>>, vector<18x256xf32>
    tpu.vector_store %arg9[%c0_26, %c0_27], %24 {strides = array<i32>} : memref<18x256xf32, #tpu.memory_space<vmem>>, vector<18x256xf32>,
    %c1_28 = arith.constant 1 : index
    %c0_29 = arith.constant 0 : index
    %26 = vector.load %arg9[%c1_28, %c0_29] : memref<18x256xf32, #tpu.memory_space<vmem>>, vector<16x256xf32>
    tpu.vector_store %arg9[%c1_28, %c0_29], %23 {strides = array<i32>} : memref<18x256xf32, #tpu.memory_space<vmem>>, vector<16x256xf32>,
    %c0_30 = arith.constant 0 : index
    %c0_31 = arith.constant 0 : index
    %c0_32 = arith.constant 0 : index
    %27 = vector.load %arg1[%c0_30, %c0_31, %c0_32] : memref<1x16x64xf32, #tpu.memory_space<vmem>>, vector<1x16x64xf32>
    %28 = vector.shape_cast %27 : vector<1x16x64xf32> to vector<16x64xf32>
    %c0_33 = arith.constant 0 : index
    %c0_34 = arith.constant 0 : index
    %29 = vector.load %arg5[%c0_33, %c0_34] : memref<64x256xf32, #tpu.memory_space<vmem>>, vector<64x256xf32>
    %cst_35 = arith.constant dense<0.000000e+00> : vector<16x256xf32>
    %30 = tpu.matmul %28, %29, %cst_35 {dimension_numbers = #tpu.dot_dimension_numbers<[1], [0], [0], [1], [0, 0, 1, 1], [], []>} : vector<16x64xf32>, vector<64x256xf32>, vector<16x256xf32> -> vector<16x256xf32>
    %c0_36 = arith.constant 0 : index
    %c0_37 = arith.constant 0 : index
    %31 = vector.load %arg9[%c0_36, %c0_37] : memref<18x256xf32, #tpu.memory_space<vmem>>, vector<16x256xf32>
    %c0_38 = arith.constant 0 : index
    %c0_39 = arith.constant 0 : index
    %c0_40 = arith.constant 0 : index
    %32 = vector.load %arg4[%c0_38, %c0_39, %c0_40] : memref<3x256x256xf32, #tpu.memory_space<vmem>>, vector<1x256x256xf32>
    %33 = vector.shape_cast %32 : vector<1x256x256xf32> to vector<256x256xf32>
    %cst_41 = arith.constant dense<0.000000e+00> : vector<16x256xf32>
    %34 = tpu.matmul %31, %33, %cst_41 {dimension_numbers = #tpu.dot_dimension_numbers<[1], [0], [0], [1], [0, 0, 1, 1], [], []>} : vector<16x256xf32>, vector<256x256xf32>, vector<16x256xf32> -> vector<16x256xf32>
    %35 = arith.addf %30, %34 : vector<16x256xf32>
    %c1_42 = arith.constant 1 : index
    %c0_43 = arith.constant 0 : index
    %36 = vector.load %arg9[%c1_42, %c0_43] : memref<18x256xf32, #tpu.memory_space<vmem>>, vector<16x256xf32>
    %c1_44 = arith.constant 1 : index
    %c0_45 = arith.constant 0 : index
    %c0_46 = arith.constant 0 : index
    %37 = vector.load %arg4[%c1_44, %c0_45, %c0_46] : memref<3x256x256xf32, #tpu.memory_space<vmem>>, vector<1x256x256xf32>
    %38 = vector.shape_cast %37 : vector<1x256x256xf32> to vector<256x256xf32>
    %cst_47 = arith.constant dense<0.000000e+00> : vector<16x256xf32>
    %39 = tpu.matmul %36, %38, %cst_47 {dimension_numbers = #tpu.dot_dimension_numbers<[1], [0], [0], [1], [0, 0, 1, 1], [], []>} : vector<16x256xf32>, vector<256x256xf32>, vector<16x256xf32> -> vector<16x256xf32>
    %40 = arith.addf %35, %39 : vector<16x256xf32>
    %c2_48 = arith.constant 2 : index
    %c0_49 = arith.constant 0 : index
    %41 = vector.load %arg9[%c2_48, %c0_49] : memref<18x256xf32, #tpu.memory_space<vmem>>, vector<16x256xf32>
    %c2_50 = arith.constant 2 : index
    %c0_51 = arith.constant 0 : index
    %c0_52 = arith.constant 0 : index
    %42 = vector.load %arg4[%c2_50, %c0_51, %c0_52] : memref<3x256x256xf32, #tpu.memory_space<vmem>>, vector<1x256x256xf32>
    %43 = vector.shape_cast %42 : vector<1x256x256xf32> to vector<256x256xf32>
    %cst_53 = arith.constant dense<0.000000e+00> : vector<16x256xf32>
    %44 = tpu.matmul %41, %43, %cst_53 {dimension_numbers = #tpu.dot_dimension_numbers<[1], [0], [0], [1], [0, 0, 1, 1], [], []>} : vector<16x256xf32>, vector<256x256xf32>, vector<16x256xf32> -> vector<16x256xf32>
    %45 = arith.addf %40, %44 : vector<16x256xf32>
    %c0_54 = arith.constant 0 : index
    %c0_55 = arith.constant 0 : index
    %46 = vector.load %arg6[%c0_54, %c0_55] : memref<1x256xf32, #tpu.memory_space<vmem>>, vector<1x256xf32>
    %47 = vector.broadcast %46 : vector<1x256xf32> to vector<16x256xf32>
    %48 = arith.addf %45, %47 : vector<16x256xf32>
    %cst_56 = arith.constant 0.000000e+00 : f32
    %49 = vector.broadcast %cst_56 : f32 to vector<16x256xf32>
    %50 = arith.maximumf %48, %49 : vector<16x256xf32>
    %c0_57 = arith.constant 0 : index
    %c0_58 = arith.constant 0 : index
    %c0_59 = arith.constant 0 : index
    %51 = vector.load %arg7[%c0_57, %c0_58, %c0_59] : memref<1x16x256xf32, #tpu.memory_space<vmem>>, vector<1x16x256xf32>
    %52 = vector.shape_cast %51 : vector<1x16x256xf32> to vector<16x256xf32>
    %53 = vector.shape_cast %50 : vector<16x256xf32> to vector<1x16x256xf32>
    tpu.vector_store %arg7[%c0_57, %c0_58, %c0_59], %53 {strides = array<i32>} : memref<1x16x256xf32, #tpu.memory_space<vmem>>, vector<1x16x256xf32>,
    return
  }
  func.func @transform_0(%arg0: i32) -> (i32, i32, i32) {
    %c0_i32 = arith.constant 0 : i32
    %c0_i32_0 = arith.constant 0 : i32
    %c0_i32_1 = arith.constant 0 : i32
    return %arg0, %c0_i32, %c0_i32_0 : i32, i32, i32
  }
  func.func @transform_1(%arg0: i32) -> (i32, i32, i32) {
    %c0_i32 = arith.constant 0 : i32
    %c0_i32_0 = arith.constant 0 : i32
    %c0_i32_1 = arith.constant 0 : i32
    %c0_i32_2 = arith.constant 0 : i32
    return %c0_i32, %c0_i32_0, %c0_i32_1 : i32, i32, i32
  }
  func.func @transform_2(%arg0: i32) -> (i32, i32) {
    %c0_i32 = arith.constant 0 : i32
    %c0_i32_0 = arith.constant 0 : i32
    %c0_i32_1 = arith.constant 0 : i32
    return %c0_i32, %c0_i32_0 : i32, i32
  }
  func.func @transform_3(%arg0: i32) -> (i32, i32, i32) {
    %c0_i32 = arith.constant 0 : i32
    %c0_i32_0 = arith.constant 0 : i32
    %c0_i32_1 = arith.constant 0 : i32
    %c0_i32_2 = arith.constant 0 : i32
    return %c0_i32, %c0_i32_0, %c0_i32_1 : i32, i32, i32
  }
  func.func @transform_4(%arg0: i32) -> (i32, i32) {
    %c0_i32 = arith.constant 0 : i32
    %c0_i32_0 = arith.constant 0 : i32
    %c0_i32_1 = arith.constant 0 : i32
    return %c0_i32, %c0_i32_0 : i32, i32
  }
  func.func @transform_5(%arg0: i32) -> (i32, i32) {
    %c0_i32 = arith.constant 0 : i32
    %c0_i32_0 = arith.constant 0 : i32
    %c0_i32_1 = arith.constant 0 : i32
    return %c0_i32, %c0_i32_0 : i32, i32
  }
  func.func @transform_6(%arg0: i32) -> (i32, i32, i32) {
    %c0_i32 = arith.constant 0 : i32
    %c0_i32_0 = arith.constant 0 : i32
    %c0_i32_1 = arith.constant 0 : i32
    return %arg0, %c0_i32, %c0_i32_0 : i32, i32, i32
  }
}

</mosaic_0001>

<bundles_post_ra>
// kernel: residual_block_forward.1
= control target key start
LH: loop header
LB: loop body
LE: loop exit
PB: predicated region body
PF: predicated region fallthrough
CT: control target
= control target key end

     0   :  { %11 = vsyncpa [#allocation5], 0  ;;  %s2131_s0 = inlined_call_operand.vmem [shape: f32[2,16,64], index: 0, kind: input, shape index: {}]   ;;  %s2132_s1 = inlined_call_operand.vmem [shape: f32[3,64,256], index: 1, kind: input, shape index: {}]   ;;  %s2133_s2 = inlined_call_operand.vmem [shape: f32[1,256], index: 2, kind: input, shape index: {}]   ;;  %s2134_s3 = inlined_call_operand.hbm [shape: f32[3,256,256], index: 3, kind: input, shape index: {}]   ;;  %s2135_s4 = inlined_call_operand.hbm [shape: f32[64,256], index: 4, kind: input, shape index: {}]   ;;  %s2136_s5 = inlined_call_operand.vmem [shape: f32[1,256], index: 5, kind: input, shape index: {}]   ;;  %s2137_s6 = inlined_call_operand.vmem [shape: f32[2,16,256], index: 6, kind: output, shape index: {}]  }
   0x1   :  { %12 = vsyncpa [#allocation7], 0  ;;  %s1815_s21 = smov 0  }
   0x2 LB: > { %s1821_s22 = sadd.s32 4294967295, %s1773_s21   ;;  %p1340_p0 = scmp.ge.s32.totalorder %s1773_s21, 1  ;;  %s1773_s21 = sphi %s1815_s21, %s18_s21  }
   0x3   : > { %p180_p1 = scmp.lt.s32.totalorder %s1773_s21, 3  ;;  %s1775_s23 = smov [#allocation4]  }
   0x4   : > { %s198_s24 = sshll.u32 %s1775_s23, 4  ;;  %p2138_p3 = scmp.eq.s32.totalorder %s1821_s22, 0  ;;  %s199_s24 = int_to_ptr.vmem [resolvable:$true] %s198_s24 }
   0x5   : > { %p1825_p2 = pnand %p1340_p0, %p180_p1  ;;  %s1776_s26 = smov [#allocation6]  }
   0x6   : > { %s211_s27 = sshll.u32 %s1776_s26, 4  ;;  %s1703_s7 = scalar_lea.hbm %s2134_s3, 24576  ;;  %s1838_s27 = int_to_ptr.vmem [resolvable:$true] %s211_s27 }
   0x7   : > { %s2140_s25 = scalar_select %p1825_p2, 1, 0 }
   0x8   : > { %p1679_p4 = pneg %p1825_p2  ;;  %p1704_p6 = scmp.ne.s32.totalorder %s2134_s3, %s1703_s7 }
   0x9   : > { %p1710_p10 = scmp.lt.u32.totalorder %s1703_s7, %s2134_s3 }
   0xa   : > { %p1834_p5 = pnand %p2138_p3, %p1679_p4 }
   0xc   : > { %p1705_p7 = pneg %p1834_p5 }
   0xe   : > { %p1706_p8 = pnand %p1705_p7, %p1704_p6 }
  0x10   : > { %p1707_p9 = pneg %p1706_p8 }
  0x12   : > { %p1712_p11 = pnand %p1710_p10, %p1707_p9 }
  0x14   : > { %1715 = shalt.err (!%p1712_p11)
}
  0x15   : > { %s1716_s12 = scalar_lea.vmem %s199_s24, 24576  ;;  %p1724_p1 = scmp.lt.s32.totalorder %s199_s24, %s199_s24 }
  0x16   : > { %p1717_p12 = scmp.ne.s32.totalorder %s199_s24, %s1716_s12  ;;  %p1725_p4 = scmp.lt.s32.totalorder %s1716_s12, %s1716_s12 }
  0x18   : > { %p1719_p13 = pnand %p1717_p12, %p1705_p7  ;;  %p1726_p3 = por %p1725_p4, %p1724_p1 }
  0x1a   : > { %p1720_p0 = pneg %p1719_p13 }
  0x1c   : > { %p1727_p2 = pnand %p1726_p3, %p1720_p0 }
  0x1e   : > { %1730 = shalt.err (!%p1727_p2)
}
  0x1f   : > { %s1777_s13 = smov 256   ;;  %s1778_s14 = smov 16  }
  0x20   : > { %1682 = dma.hbm_to_vmem [thread:$0]  (!%p1834_p5), %s2134_s3, 24576, %s199_s24, [#allocation5], %s1777_s13, %s1777_s13, %s1778_s14  }
  0x21   : > { %s1731_s19 = scalar_lea.hbm %s2135_s4, 2048 }
  0x22   : > { %p1732_p6 = scmp.ne.s32.totalorder %s2135_s4, %s1731_s19  ;;  %p1738_p8 = scmp.lt.u32.totalorder %s1731_s19, %s2135_s4 }
  0x24   : > { %p1734_p2 = pnand %p1732_p6, %p1705_p7 }
  0x26   : > { %p1735_p3 = pneg %p1734_p2 }
  0x28   : > { %p1740_p9 = pnand %p1738_p8, %p1735_p3 }
  0x2a   : > { %1743 = shalt.err (!%p1740_p9)
}
  0x2b   : > { %s1744_s24 = scalar_lea.vmem %s1838_s27, 2048  ;;  %p1752_p13 = scmp.lt.s32.totalorder %s1838_s27, %s1838_s27 }
  0x2c   : > { %p1745_p10 = scmp.ne.s32.totalorder %s1838_s27, %s1744_s24  ;;  %p1753_p0 = scmp.lt.s32.totalorder %s1744_s24, %s1744_s24 }
  0x2e   : > { %p1747_p11 = pnand %p1745_p10, %p1705_p7  ;;  %p1754_p1 = por %p1753_p0, %p1752_p13 }
  0x30   : > { %p1748_p12 = pneg %p1747_p11 }
  0x32   : > { %p1755_p4 = pnand %p1754_p1, %p1748_p12 }
  0x34   : > { %1758 = shalt.err (!%p1755_p4)
}
  0x35   : > { %1685 = dma.hbm_to_vmem [thread:$0]  (!%p1834_p5), %s2135_s4, 2048, %s1838_s27, [#allocation7], %s1777_s13, %s1777_s13, %s1778_s14  }
  0x36   : > { %p2142_p6 = scmp.ne.s32.totalorder %s2140_s25, 0 }
  0x37   : > { %p2143_p2 = scmp.eq.s32.totalorder (!%p2142_p6), %s1821_s22, 0 }
  0x38   : > { %238 = sbr.rel (%p2142_p6) target bundleno = 638 (0x27e), region = 44 }
  0x3f   : > { %1764 = dma.done.wait (%p2143_p2), [#allocation5], 24576   ;;  %p2144_p7 = pmov %p2143_p2 }
  0x40   : > { %p2145_p3 = pmov %p2143_p2 }
  0x41   : > { %1766 = vsyncadd (%p2144_p7), [#allocation5], 4294942720 }
  0x42   : > { %1768 = dma.done.wait (%p2145_p3), [#allocation7], 2048   ;;  %p2146_p8 = pmov %p2143_p2 }
  0x43   : > { %p272_p9 = scmp.lt.s32.totalorder %s1821_s22, 1  ;;  %vm282_vm0 = vcmask 523264   ;;  %vm285_vm1 = vcmask 517120   ;;  %v1779_v0 = vmov 0.0   ;;  %v1352_v1 = vld [vmem:[%s2132_s1 + $0x88] sm:$0xff]  ;;  %v1354_v2 = vld [vmem:[%s2132_s1 + $0x98] sm:$0xff] }
  0x44   : > { %1770 = vsyncadd (%p2146_p8), [#allocation7], 4294965248  ;;  %398 = vmatprep.mubr.f32.mxu0 %v1779_v0  ;;  %620 = vst [vmem:[#allocation3] sm:$0xff] %v1779_v0  ;;  %v1351_v3 = vld [vmem:[%s2132_s1 + $0x80] sm:$0xff]  ;;  %v1395_v4 = vpack.c.bf16 %v1354_v2, %v1352_v1  ;;  %v1353_v5 = vld [vmem:[%s2132_s1 + $0x90] sm:$0xff]  ;;  %vm630_vm2 = vcmask 1040384  }
  0x45   : > { %621 = vst [vmem:[#allocation3 + $0x8] sm:$0xff] %v1779_v0  ;;  %624 = vst [vmem:[#allocation3 + $0x20] sm:$0x3] %v1779_v0  ;;  %s2148_s22 = smov (!%p272_p9, %s1821_s22), 1  ;;  %v1356_v6 = vld [vmem:[%s2132_s1 + $0xa8] sm:$0xff]  ;;  %v1358_v7 = vld [vmem:[%s2132_s1 + $0xb8] sm:$0xff]  ;;  %v1397_v8 = vpack.c.bf16 %v1353_v5, %v1351_v3 }
  0x46   : > { %625 = vst [vmem:[#allocation3 + $0x28] sm:$0x3] %v1779_v0  ;;  %283 = vst.msk [vmem:[#allocation2] sm:$0xff] %vm282_vm0, %v1779_v0  ;;  %s1393_s11 = sshll.u32 %s2148_s22, 4  ;;  %v1399_v9 = vpack.c.bf16 %v1358_v7, %v1356_v6  ;;  %v1355_v10 = vld [vmem:[%s2132_s1 + $0xa0] sm:$0xff]  ;;  %v1357_v11 = vld [vmem:[%s2132_s1 + $0xb0] sm:$0xff]  ;;  %1396 = vmatprep.subr.bf16.mxu0 %v1395_v4 }
  0x47   : > { %284 = vst.msk [vmem:[#allocation2 + $0x8] sm:$0xff] %vm282_vm0, %v1779_v0  ;;  %v1360_v12 = vld [vmem:[%s2132_s1 + $0xc8] sm:$0xff]  ;;  %v1362_v13 = vld [vmem:[%s2132_s1 + $0xd8] sm:$0xff]  ;;  %s276_s27 = scalar_lea.vmem %s2131_s0, %s1393_s11  ;;  %1398 = vmatpush1.bf16.msra.mxu0 %v1397_v8  ;;  %v1401_v14 = vpack.c.bf16 %v1357_v11, %v1355_v10  ;;  %v1359_v16 = vld [vmem:[%s2132_s1 + $0xc0] sm:$0xff]  ;;  %vm972_vm3 = vcmask 1046528   ;;  %vm1141_vm4 = vcmask 1045504  }
  0x48   : > { %286 = vst.msk [vmem:[#allocation2 + $0x10] sm:$0x3] %vm285_vm1, %v1779_v0  ;;  %1400 = vmatprep.subr.bf16.mxu0 %v1399_v9  ;;  %v1403_v15 = vpack.c.bf16 %v1362_v13, %v1360_v12  ;;  %v1361_v17 = vld [vmem:[%s2132_s1 + $0xd0] sm:$0xff]  ;;  %v1364_v18 = vld [vmem:[%s2132_s1 + $0xe8] sm:$0xff]  ;;  %v1366_v19 = vld [vmem:[%s2132_s1 + $0xf8] sm:$0xff]  ;;  %s1394_s23 = sshll.u32 %s2148_s22, 5 }
  0x49   : > { %v1957_v20 = vld [vmem:[%s276_s27] sm:$0xff]  ;;  %v1405_v21 = vpack.c.bf16 %v1361_v17, %v1359_v16  ;;  %v1407_v22 = vpack.c.bf16 %v1366_v19, %v1364_v18  ;;  %v1365_v24 = vld [vmem:[%s2132_s1 + $0xf0] sm:$0xff]  ;;  %v294_v25 = vld [vmem:[%s2132_s1 + $0x8] sm:$0xff]  ;;  %s281_s24 = scalar_lea.vmem %s2137_s6, %s1394_s23 }
  0x4a   : > { %289 = vst.msk [vmem:[#allocation2 + $0x1] sm:$0xff] %vm282_vm0, %v1957_v20  ;;  %v1363_v23 = vld [vmem:[%s2132_s1 + $0xe0] sm:$0xff]  ;;  %v296_v26 = vld [vmem:[%s2132_s1 + $0x18] sm:$0xff]  ;;  %v1973_v27 = vld [vmem:[%s276_s27 + $0x8] sm:$0xff] }
  0x4b   : > { %1402 = vmatpush1.bf16.msra.mxu0 %v1401_v14  ;;  %290 = vst.msk [vmem:[#allocation2 + $0x9] sm:$0xff] %vm282_vm0, %v1973_v27  ;;  %v1409_v28 = vpack.c.bf16 %v1365_v24, %v1363_v23  ;;  %v1411_v29 = vpack.c.bf16 %v296_v26, %v294_v25  ;;  %v293_v30 = vld [vmem:[%s2132_s1] sm:$0xff]  ;;  %v295_v31 = vld [vmem:[%s2132_s1 + $0x10] sm:$0xff]  ;;  %v298_v32 = vld [vmem:[%s2132_s1 + $0x28] sm:$0xff] }
  0x4c   : > { %1404 = vmatprep.subr.bf16.mxu0 %v1403_v15  ;;  %v300_v33 = vld [vmem:[%s2132_s1 + $0x38] sm:$0xff]  ;;  %v1413_v35 = vpack.c.bf16 %v295_v31, %v293_v30  ;;  %v297_v37 = vld [vmem:[%s2132_s1 + $0x20] sm:$0xff]  ;;  %v299_v38 = vld [vmem:[%s2132_s1 + $0x30] sm:$0xff] }
  0x4d   : > { %v1415_v36 = vpack.c.bf16 %v300_v33, %v298_v32  ;;  %v302_v39 = vld [vmem:[%s2132_s1 + $0x48] sm:$0xff]  ;;  %v304_v40 = vld [vmem:[%s2132_s1 + $0x58] sm:$0xff]  ;;  %v1417_v41 = vpack.c.bf16 %v299_v38, %v297_v37  ;;  %v301_v44 = vld [vmem:[%s2132_s1 + $0x40] sm:$0xff] }
  0x4e   : > { %v1419_v43 = vpack.c.bf16 %v304_v40, %v302_v39  ;;  %v303_v45 = vld [vmem:[%s2132_s1 + $0x50] sm:$0xff]  ;;  %v306_v46 = vld [vmem:[%s2132_s1 + $0x68] sm:$0xff]  ;;  %v308_v47 = vld [vmem:[%s2132_s1 + $0x78] sm:$0xff] }
  0x4f   : > { %1406 = vmatpush1.bf16.msra.mxu0 %v1405_v21  ;;  %v903_v48 = vld [vmem:[#allocation4 + $0x208] sm:$0xff]  ;;  %v905_v49 = vld [vmem:[#allocation4 + $0x218] sm:$0xff]  ;;  %v902_v51 = vld [vmem:[#allocation4 + $0x200] sm:$0xff]  ;;  %v1421_v53 = vpack.c.bf16 %v303_v45, %v301_v44  ;;  %v1423_v57 = vpack.c.bf16 %v308_v47, %v306_v46 }
  0x50   : > { %1408 = vmatprep.subr.bf16.mxu0 %v1407_v22  ;;  %v1523_v50 = vpack.c.bf16 %v905_v49, %v903_v48  ;;  %v904_v52 = vld [vmem:[#allocation4 + $0x210] sm:$0xff]  ;;  %v305_v54 = vld [vmem:[%s2132_s1 + $0x60] sm:$0xff]  ;;  %v907_v56 = vld [vmem:[#allocation4 + $0x228] sm:$0xff] }
  0x51   : > { %v309_v34 = vld [vmem:[#allocation2 + $0x1] sm:$0xff]  ;;  %v1525_v55 = vpack.c.bf16 %v904_v52, %v902_v51  ;;  %v307_v58 = vld [vmem:[%s2132_s1 + $0x70] sm:$0xff]  ;;  %v1374_v61 = vld [vmem:[%s2132_s1 + $0x118] sm:$0xff] }
  0x52   : > { %v310_v42 = vld [vmem:[#allocation2 + $0x9] sm:$0xff]  ;;  %1524 = vmatprep.subr.bf16.mxu1 %v1523_v50  ;;  %v909_v60 = vld [vmem:[#allocation4 + $0x238] sm:$0xff]  ;;  %v908_v1 = vld [vmem:[#allocation4 + $0x230] sm:$0xff]  ;;  %v1425_v5 = vpack.c.bf16 %v307_v58, %v305_v54 }
  0x53   : > { %1410 = vmatpush1.bf16.msra.mxu0 %v1409_v28  ;;  %v1372_v59 = vld [vmem:[%s2132_s1 + $0x108] sm:$0xff]  ;;  %1526 = vmatpush1.bf16.msra.mxu1 %v1525_v55  ;;  %v1527_v62 = vpack.c.bf16 %v909_v60, %v907_v56  ;;  %v911_v3 = vld [vmem:[#allocation4 + $0x248] sm:$0xff]  ;;  %v913_v4 = vld [vmem:[#allocation4 + $0x258] sm:$0xff] }
  0x54   : > { %1412 = vmatprep.subr.bf16.mxu0 %v1411_v29  ;;  %v906_v63 = vld [vmem:[#allocation4 + $0x220] sm:$0xff]  ;;  %v1371_v6 = vld [vmem:[%s2132_s1 + $0x100] sm:$0xff]  ;;  %v1531_v7 = vpack.c.bf16 %v913_v4, %v911_v3  ;;  %v1427_v9 = vpack.c.bf16 %v1374_v61, %v1372_v59  ;;  %v1373_v10 = vld [vmem:[%s2132_s1 + $0x110] sm:$0xff] }
  0x55   : > { %v1529_v2 = vpack.c.bf16 %v908_v1, %v906_v63  ;;  %1528 = vmatprep.subr.bf16.mxu1 %v1527_v62  ;;  %v910_v8 = vld [vmem:[#allocation4 + $0x240] sm:$0xff]  ;;  %v912_v12 = vld [vmem:[#allocation4 + $0x250] sm:$0xff]  ;;  %v915_v15 = vld [vmem:[#allocation4 + $0x268] sm:$0xff]  ;;  %v1429_v22 = vpack.c.bf16 %v1373_v10, %v1371_v6 }
  0x56   : > { %1367 = vmatmul.mubr.msk.f32.vlgmr.msra.gmra.mrb[0].mxu0 %vm282_vm0, %v309_v34  ;;  %v1376_v11 = vld [vmem:[%s2132_s1 + $0x128] sm:$0xff]  ;;  %v1378_v13 = vld [vmem:[%s2132_s1 + $0x138] sm:$0xff]  ;;  %v1533_v14 = vpack.c.bf16 %v912_v12, %v910_v8  ;;  %v917_v16 = vld [vmem:[#allocation4 + $0x278] sm:$0xff] }
  0x57   : > { %1414 = vmatpush1.bf16.msra.mxu0 %v1413_v35  ;;  %404 = vmatprep.mubr.f32.mxu0 %v1779_v0  ;;  %v1535_v17 = vpack.c.bf16 %v917_v16, %v915_v15  ;;  %v914_v18 = vld [vmem:[#allocation4 + $0x260] sm:$0xff]  ;;  %v916_v19 = vld [vmem:[#allocation4 + $0x270] sm:$0xff]  ;;  %v291_v21 = vld [vmem:[#allocation2] sm:$0xff]  ;;  %v1431_v24 = vpack.c.bf16 %v1378_v13, %v1376_v11 }
  0x58   : > { %1416 = vmatprep.subr.bf16.mxu0 %v1415_v36  ;;  %1530 = vmatpush1.bf16.msra.mxu1 %v1529_v2  ;;  %v919_v23 = vld [vmem:[#allocation4 + $0x288] sm:$0xff]  ;;  %v1375_v25 = vld [vmem:[%s2132_s1 + $0x120] sm:$0xff]  ;;  %v1380_v29 = vld [vmem:[%s2132_s1 + $0x148] sm:$0xff]  ;;  %v1537_v31 = vpack.c.bf16 %v916_v19, %v914_v18 }
  0x59   : > { %1532 = vmatprep.subr.bf16.mxu1 %v1531_v7  ;;  %v1377_v26 = vld [vmem:[%s2132_s1 + $0x130] sm:$0xff]  ;;  %v921_v28 = vld [vmem:[#allocation4 + $0x298] sm:$0xff]  ;;  %v1382_v30 = vld [vmem:[%s2132_s1 + $0x158] sm:$0xff] }
  0x5a   : > { %1368 = vmatmul.mubr.msk.f32.gmra.mrb[2].mxu0 %vm282_vm0, %v310_v42  ;;  %v1539_v32 = vpack.c.bf16 %v921_v28, %v919_v23  ;;  %v918_v33 = vld [vmem:[#allocation4 + $0x280] sm:$0xff]  ;;  %v920_v34 = vld [vmem:[#allocation4 + $0x290] sm:$0xff]  ;;  %v1433_v35 = vpack.c.bf16 %v1377_v26, %v1375_v25  ;;  %v923_v37 = vld [vmem:[#allocation4 + $0x2a8] sm:$0xff]  ;;  %v1435_v39 = vpack.c.bf16 %v1382_v30, %v1380_v29 }
  0x5b   : > { %1418 = vmatpush1.bf16.msra.mxu0 %v1417_v41  ;;  %481 = vmatprep.mubr.f32.mxu0 %v1779_v0  ;;  %v292_v36 = vld [vmem:[#allocation2 + $0x8] sm:$0xff]  ;;  %v925_v38 = vld [vmem:[#allocation4 + $0x2b8] sm:$0xff]  ;;  %v1381_v41 = vld [vmem:[%s2132_s1 + $0x150] sm:$0xff]  ;;  %v1541_v44 = vpack.c.bf16 %v920_v34, %v918_v33 }
  0x5c   : > { %1420 = vmatprep.subr.bf16.mxu0 %v1419_v43  ;;  %1534 = vmatpush1.bf16.msra.mxu1 %v1533_v14  ;;  %v1379_v40 = vld [vmem:[%s2132_s1 + $0x140] sm:$0xff]  ;;  %v1384_v42 = vld [vmem:[%s2132_s1 + $0x168] sm:$0xff]  ;;  %v1386_v43 = vld [vmem:[%s2132_s1 + $0x178] sm:$0xff]  ;;  %v1543_v45 = vpack.c.bf16 %v925_v38, %v923_v37 }
  0x5d   : > { %1536 = vmatprep.subr.bf16.mxu1 %v1535_v17  ;;  %v922_v46 = vld [vmem:[#allocation4 + $0x2a0] sm:$0xff]  ;;  %v924_v47 = vld [vmem:[#allocation4 + $0x2b0] sm:$0xff]  ;;  %v1437_v48 = vpack.c.bf16 %v1381_v41, %v1379_v40  ;;  %v927_v49 = vld [vmem:[#allocation4 + $0x2c8] sm:$0xff]  ;;  %v1439_v51 = vpack.c.bf16 %v1386_v43, %v1384_v42 }
  0x5e   : > { %v929_v50 = vld [vmem:[#allocation4 + $0x2d8] sm:$0xff]  ;;  %v672_v54 = vld [vmem:[#allocation4 + $0x8] sm:$0xff]  ;;  %v1545_v56 = vpack.c.bf16 %v924_v47, %v922_v46  ;;  %v926_v58 = vld [vmem:[#allocation4 + $0x2c0] sm:$0xff] }
  0x5f   : > { %1422 = vmatpush1.bf16.msra.mxu0 %v1421_v53  ;;  %v1383_v52 = vld [vmem:[%s2132_s1 + $0x160] sm:$0xff]  ;;  %v1385_v53 = vld [vmem:[%s2132_s1 + $0x170] sm:$0xff]  ;;  %v928_v59 = vld [vmem:[#allocation4 + $0x2d0] sm:$0xff] }
  0x60   : > { %1424 = vmatprep.subr.bf16.mxu0 %v1423_v57  ;;  %1538 = vmatpush1.bf16.msra.mxu1 %v1537_v31  ;;  %v674_v55 = vld [vmem:[#allocation4 + $0x18] sm:$0xff]  ;;  %v1547_v57 = vpack.c.bf16 %v929_v50, %v927_v49  ;;  %v1441_v60 = vpack.c.bf16 %v1385_v53, %v1383_v52  ;;  %v931_v61 = vld [vmem:[#allocation4 + $0x2e8] sm:$0xff]  ;;  %v671_v1 = vld [vmem:[#allocation4] sm:$0xff] }
  0x61   : > { %1540 = vmatprep.subr.bf16.mxu1 %v1539_v32  ;;  %v933_v62 = vld [vmem:[#allocation4 + $0x2f8] sm:$0xff]  ;;  %v1443_v63 = vpack.c.bf16 %v674_v55, %v672_v54  ;;  %v673_v2 = vld [vmem:[#allocation4 + $0x10] sm:$0xff]  ;;  %v676_v3 = vld [vmem:[#allocation4 + $0x28] sm:$0xff] }
  0x62   : > { %v678_v4 = vld [vmem:[#allocation4 + $0x38] sm:$0xff]  ;;  %v1551_v6 = vpack.c.bf16 %v933_v62, %v931_v61  ;;  %v930_v7 = vld [vmem:[#allocation4 + $0x2e0] sm:$0xff]  ;;  %v932_v8 = vld [vmem:[#allocation4 + $0x2f0] sm:$0xff]  ;;  %v1445_v10 = vpack.c.bf16 %v673_v2, %v671_v1 }
  0x63   : > { %1426 = vmatpush1.bf16.msra.mxu0 %v1425_v5  ;;  %v1549_v5 = vpack.c.bf16 %v928_v59, %v926_v58  ;;  %v935_v11 = vld [vmem:[#allocation4 + $0x308] sm:$0xff]  ;;  %v937_v12 = vld [vmem:[#allocation4 + $0x318] sm:$0xff]  ;;  %v1447_v13 = vpack.c.bf16 %v678_v4, %v676_v3  ;;  %v675_v14 = vld [vmem:[#allocation4 + $0x20] sm:$0xff]  ;;  %v1553_v18 = vpack.c.bf16 %v932_v8, %v930_v7 }
  0x64   : > { %1428 = vmatprep.subr.bf16.mxu0 %v1427_v9  ;;  %1542 = vmatpush1.bf16.msra.mxu1 %v1541_v44  ;;  %v494_v9 = vld [vmem:[#allocation2 + $0x2] sm:$0xff]  ;;  %v677_v15 = vld [vmem:[#allocation4 + $0x30] sm:$0xff]  ;;  %v680_v16 = vld [vmem:[#allocation4 + $0x48] sm:$0xff]  ;;  %v1555_v19 = vpack.c.bf16 %v937_v12, %v935_v11 }
  0x65   : > { %1544 = vmatprep.subr.bf16.mxu1 %v1543_v45  ;;  %v682_v17 = vld [vmem:[#allocation4 + $0x58] sm:$0xff]  ;;  %v495_v23 = vld [vmem:[#allocation2 + $0xa] sm:$0xff]  ;;  %v681_v30 = vld [vmem:[#allocation4 + $0x50] sm:$0xff] }
  0x66   : > { %1369 = vmatmul.mubr.msk.f32.vlgmr.msra.gmra.mrb[0].mxu0 %vm282_vm0, %v291_v21  ;;  %v934_v21 = vld [vmem:[#allocation4 + $0x300] sm:$0xff]  ;;  %v939_v25 = vld [vmem:[#allocation4 + $0x328] sm:$0xff]  ;;  %v941_v26 = vld [vmem:[#allocation4 + $0x338] sm:$0xff]  ;;  %v1451_v28 = vpack.c.bf16 %v682_v17, %v680_v16 }
  0x67   : > { %1430 = vmatpush1.bf16.msra.mxu0 %v1429_v22  ;;  %487 = vmatprep.mubr.f32.mxu0 %v1779_v0  ;;  %v936_v22 = vld [vmem:[#allocation4 + $0x310] sm:$0xff]  ;;  %v679_v29 = vld [vmem:[#allocation4 + $0x40] sm:$0xff]  ;;  %v684_v31 = vld [vmem:[#allocation4 + $0x68] sm:$0xff]  ;;  %v1559_v34 = vpack.c.bf16 %v941_v26, %v939_v25 }
  0x68   : > { %1432 = vmatprep.subr.bf16.mxu0 %v1431_v24  ;;  %1546 = vmatpush1.bf16.msra.mxu1 %v1545_v56  ;;  %v1449_v24 = vpack.c.bf16 %v677_v15, %v675_v14  ;;  %v686_v32 = vld [vmem:[#allocation4 + $0x78] sm:$0xff]  ;;  %v1557_v33 = vpack.c.bf16 %v936_v22, %v934_v21  ;;  %v1453_v37 = vpack.c.bf16 %v681_v30, %v679_v29  ;;  %v685_v40 = vld [vmem:[#allocation4 + $0x70] sm:$0xff]  ;;  %v688_v41 = vld [vmem:[#allocation4 + $0x88] sm:$0xff] }
  0x69   : > { %1548 = vmatprep.subr.bf16.mxu1 %v1547_v57  ;;  %v1455_v38 = vpack.c.bf16 %v686_v32, %v684_v31  ;;  %v690_v42 = vld [vmem:[#allocation4 + $0x98] sm:$0xff]  ;;  %v687_v46 = vld [vmem:[#allocation4 + $0x80] sm:$0xff]  ;;  %v689_v47 = vld [vmem:[#allocation4 + $0x90] sm:$0xff] }
  0x6a   : > { %1370 = vmatmul.mubr.msk.f32.gmra.mrb[2].mxu0 %vm282_vm0, %v292_v36  ;;  %v940_v36 = vld [vmem:[#allocation4 + $0x330] sm:$0xff]  ;;  %v1459_v45 = vpack.c.bf16 %v690_v42, %v688_v41  ;;  %v694_v49 = vld [vmem:[#allocation4 + $0xb8] sm:$0xff]  ;;  %v1461_v50 = vpack.c.bf16 %v689_v47, %v687_v46  ;;  %v691_v52 = vld [vmem:[#allocation4 + $0xa0] sm:$0xff] }
  0x6b   : > { %1434 = vmatpush1.bf16.msra.mxu0 %v1433_v35  ;;  %583 = vmatprep.mubr.f32.mxu0 %v1779_v0  ;;  %v938_v35 = vld [vmem:[#allocation4 + $0x320] sm:$0xff]  ;;  %v693_v53 = vld [vmem:[#allocation4 + $0xb0] sm:$0xff]  ;;  %v696_v54 = vld [vmem:[#allocation4 + $0xc8] sm:$0xff] }
  0x6c   : > { %1436 = vmatprep.subr.bf16.mxu0 %v1435_v39  ;;  %1550 = vmatpush1.bf16.msra.mxu1 %v1549_v5  ;;  %v683_v39 = vld [vmem:[#allocation4 + $0x60] sm:$0xff]  ;;  %v1561_v43 = vpack.c.bf16 %v940_v36, %v938_v35  ;;  %v698_v55 = vld [vmem:[#allocation4 + $0xd8] sm:$0xff]  ;;  %v1465_v56 = vpack.c.bf16 %v693_v53, %v691_v52  ;;  %v697_v59 = vld [vmem:[#allocation4 + $0xd0] sm:$0xff] }
  0x6d   : > { %1552 = vmatprep.subr.bf16.mxu1 %v1551_v6  ;;  %v1457_v44 = vpack.c.bf16 %v685_v40, %v683_v39  ;;  %v1467_v57 = vpack.c.bf16 %v698_v55, %v696_v54  ;;  %v695_v58 = vld [vmem:[#allocation4 + $0xc0] sm:$0xff]  ;;  %v702_v61 = vld [vmem:[#allocation4 + $0xf8] sm:$0xff]  ;;  %v701_v2 = vld [vmem:[#allocation4 + $0xf0] sm:$0xff] }
  0x6e   : > { %v1469_v62 = vpack.c.bf16 %v697_v59, %v695_v58  ;;  %v699_v1 = vld [vmem:[#allocation4 + $0xe0] sm:$0xff]  ;;  %v704_v3 = vld [vmem:[#allocation4 + $0x108] sm:$0xff]  ;;  %v706_v4 = vld [vmem:[#allocation4 + $0x118] sm:$0xff] }
  0x6f   : > { %1438 = vmatpush1.bf16.msra.mxu0 %v1437_v48  ;;  %v692_v48 = vld [vmem:[#allocation4 + $0xa8] sm:$0xff]  ;;  %v1473_v5 = vpack.c.bf16 %v701_v2, %v699_v1  ;;  %v1475_v6 = vpack.c.bf16 %v706_v4, %v704_v3  ;;  %v703_v7 = vld [vmem:[#allocation4 + $0x100] sm:$0xff]  ;;  %v705_v8 = vld [vmem:[#allocation4 + $0x110] sm:$0xff] }
  0x70   : > { %1440 = vmatprep.subr.bf16.mxu0 %v1439_v51  ;;  %1554 = vmatpush1.bf16.msra.mxu1 %v1553_v18  ;;  %v1463_v51 = vpack.c.bf16 %v694_v49, %v692_v48  ;;  %v1477_v11 = vpack.c.bf16 %v705_v8, %v703_v7  ;;  %v709_v14 = vld [vmem:[#allocation4 + $0x130] sm:$0xff]  ;;  %v712_v15 = vld [vmem:[#allocation4 + $0x148] sm:$0xff]  ;;  %v714_v16 = vld [vmem:[#allocation4 + $0x158] sm:$0xff] }
  0x71   : > { %1556 = vmatprep.subr.bf16.mxu1 %v1555_v19  ;;  %v1483_v18 = vpack.c.bf16 %v714_v16, %v712_v15  ;;  %v711_v19 = vld [vmem:[#allocation4 + $0x140] sm:$0xff]  ;;  %v713_v21 = vld [vmem:[#allocation4 + $0x150] sm:$0xff]  ;;  %v716_v22 = vld [vmem:[#allocation4 + $0x168] sm:$0xff] }
  0x72   : > { %v715_v26 = vld [vmem:[#allocation4 + $0x160] sm:$0xff]  ;;  %v943_v30 = vld [vmem:[#allocation4 + $0x348] sm:$0xff]  ;;  %v945_v31 = vld [vmem:[#allocation4 + $0x358] sm:$0xff] }
  0x73   : > { %1442 = vmatpush1.bf16.msra.mxu0 %v1441_v60  ;;  %v700_v60 = vld [vmem:[#allocation4 + $0xe8] sm:$0xff]  ;;  %v1563_v32 = vpack.c.bf16 %v945_v31, %v943_v30  ;;  %v722_v39 = vld [vmem:[#allocation4 + $0x198] sm:$0xff]  ;;  %v946_v41 = vld [vmem:[#allocation4 + $0x360] sm:$0xff] }
  0x74   : > { %1444 = vmatprep.subr.bf16.mxu0 %v1443_v63  ;;  %1558 = vmatpush1.bf16.msra.mxu1 %v1557_v33  ;;  %v1471_v63 = vpack.c.bf16 %v702_v61, %v700_v60  ;;  %v942_v33 = vld [vmem:[#allocation4 + $0x340] sm:$0xff]  ;;  %v947_v36 = vld [vmem:[#allocation4 + $0x368] sm:$0xff]  ;;  %v948_v46 = vld [vmem:[#allocation4 + $0x370] sm:$0xff] }
  0x75   : > { %1560 = vmatprep.subr.bf16.mxu1 %v1559_v34  ;;  %v944_v34 = vld [vmem:[#allocation4 + $0x350] sm:$0xff]  ;;  %v1569_v47 = vpack.c.bf16 %v948_v46, %v946_v41  ;;  %v951_v48 = vld [vmem:[#allocation4 + $0x388] sm:$0xff]  ;;  %v953_v49 = vld [vmem:[#allocation4 + $0x398] sm:$0xff] }
  0x76   : > { %1387 = vmatmul.mubr.msk.f32.vlgmr.msra.gmra.mrb[0].mxu0 %vm282_vm0, %v494_v9  ;;  %v708_v9 = vld [vmem:[#allocation4 + $0x128] sm:$0xff]  ;;  %v1565_v35 = vpack.c.bf16 %v944_v34, %v942_v33  ;;  %v1571_v52 = vpack.c.bf16 %v953_v49, %v951_v48  ;;  %v950_v53 = vld [vmem:[#allocation4 + $0x380] sm:$0xff]  ;;  %v957_v61 = vld [vmem:[#allocation4 + $0x3b8] sm:$0xff] }
  0x77   : > { %589 = vmatprep.mubr.f32.mxu0 %v1779_v0  ;;  %1446 = vmatpush1.bf16.msra.mxu0 %v1445_v10  ;;  %v710_v10 = vld [vmem:[#allocation4 + $0x138] sm:$0xff]  ;;  %v723_v55 = vld [vmem:[#allocation4 + $0x1a0] sm:$0xff]  ;;  %v955_v60 = vld [vmem:[#allocation4 + $0x3a8] sm:$0xff] }
  0x78   : > { %1448 = vmatprep.subr.bf16.mxu0 %v1447_v13  ;;  %1562 = vmatpush1.bf16.msra.mxu1 %v1561_v43  ;;  %v1479_v12 = vpack.c.bf16 %v710_v10, %v708_v9  ;;  %v707_v13 = vld [vmem:[#allocation4 + $0x120] sm:$0xff]  ;;  %v1575_v1 = vpack.c.bf16 %v957_v61, %v955_v60  ;;  %v959_v9 = vld [vmem:[#allocation4 + $0x3c8] sm:$0xff]  ;;  %v961_v10 = vld [vmem:[#allocation4 + $0x3d8] sm:$0xff] }
  0x79   : > { %v1481_v17 = vpack.c.bf16 %v709_v14, %v707_v13  ;;  %1564 = vmatprep.subr.bf16.mxu1 %v1563_v32  ;;  %v719_v43 = vld [vmem:[#allocation4 + $0x180] sm:$0xff]  ;;  %v1579_v13 = vpack.c.bf16 %v961_v10, %v959_v9  ;;  %v733_v16 = vld [vmem:[#allocation4 + $0x1f0] sm:$0xff]  ;;  %v1074_v32 = vld [vmem:[#allocation4 + $0x408] sm:$0xff] }
  0x7a   : > { %1388 = vmatmul.mubr.msk.f32.gmra.mrb[2].mxu0 %vm282_vm0, %v495_v23  ;;  %v718_v23 = vld [vmem:[#allocation4 + $0x178] sm:$0xff]  ;;  %v954_v2 = vld [vmem:[#allocation4 + $0x3a0] sm:$0xff]  ;;  %v964_v30 = vld [vmem:[#allocation4 + $0x3f0] sm:$0xff] }
  0x7b   : > { %1450 = vmatpush1.bf16.msra.mxu0 %v1449_v24  ;;  %v1485_v24 = vpack.c.bf16 %v713_v21, %v711_v19  ;;  %v1487_v25 = vpack.c.bf16 %v718_v23, %v716_v22  ;;  %v727_v4 = vld [vmem:[#allocation4 + $0x1c0] sm:$0xff]  ;;  %v960_v19 = vld [vmem:[#allocation4 + $0x3d0] sm:$0xff]  ;;  %v652_v22 = vld [vmem:[#allocation6 + $0x8] sm:$0xff] }
  0x7c   : > { %1452 = vmatprep.subr.bf16.mxu0 %v1451_v28  ;;  %v717_v28 = vld [vmem:[#allocation4 + $0x170] sm:$0xff]  ;;  %1566 = vmatpush1.bf16.msra.mxu1 %v1565_v35  ;;  %v731_v15 = vld [vmem:[#allocation4 + $0x1e0] sm:$0xff]  ;;  %v654_v23 = vld [vmem:[#allocation6 + $0x18] sm:$0xff]  ;;  %v602_v35 = vlaneseq }
  0x7d   : > { %v1489_v29 = vpack.c.bf16 %v717_v28, %v715_v26  ;;  %v965_v26 = vld [vmem:[#allocation4 + $0x3f8] sm:$0xff]  ;;  %v653_v60 = vld [vmem:[#allocation6 + $0x10] sm:$0xff] }
  0x7e   : > { %v1076_v33 = vld [vmem:[#allocation4 + $0x418] sm:$0xff] }
  0x7f   : > { %1454 = vmatpush1.bf16.msra.mxu0 %v1453_v37  ;;  %v949_v37 = vld [vmem:[#allocation4 + $0x378] sm:$0xff]  ;;  %v1587_v34 = vpack.c.bf16 %v1076_v33, %v1074_v32 }
  0x80   : > { %1456 = vmatprep.subr.bf16.mxu0 %v1455_v38  ;;  %v720_v38 = vld [vmem:[#allocation4 + $0x188] sm:$0xff]  ;;  %v1567_v40 = vpack.c.bf16 %v949_v37, %v947_v36  ;;  %v2078_v36 = vshrl.u32 %v602_v35, 7 }
  0x81   : > { %v1491_v42 = vpack.c.bf16 %v722_v39, %v720_v38  ;;  %v600_v38 = vld [vmem:[%s2133_s2] sm:$0x3]  ;;  %v1082_v35 = vld [vmem:[#allocation4 + $0x448] sm:$0xff] }
  0x82   : > { %1568 = vmatprep.subr.bf16.mxu1 %v1567_v40  ;;  %v604_v37 = vsub.s32 0, %v2078_v36  ;;  %v608_v39 = vsub.s32 1, %v2078_v36 }
  0x83   : > { %1458 = vmatpush1.bf16.msra.mxu0 %v1457_v44  ;;  %v721_v44 = vld [vmem:[#allocation4 + $0x190] sm:$0xff]  ;;  %1570 = vmatpush1.bf16.msra.mxu1 %v1569_v47 }
  0x84   : > { %1460 = vmatprep.subr.bf16.mxu0 %v1459_v45  ;;  %v1493_v45 = vpack.c.bf16 %v721_v44, %v719_v43  ;;  %1572 = vmatprep.subr.bf16.mxu1 %v1571_v52  ;;  %v605_v40 = vrot.slane %v600_v38, %v604_v37  ;;  %v609_v41 = vrot.slane %v600_v38, %v608_v39  ;;  %v1084_v38 = vld [vmem:[#allocation4 + $0x458] sm:$0xff] }
  0x87   : > { %1462 = vmatpush1.bf16.msra.mxu0 %v1461_v50  ;;  %v724_v50 = vld [vmem:[#allocation4 + $0x1a8] sm:$0xff] }
  0x88   : > { %1464 = vmatprep.subr.bf16.mxu0 %v1463_v51  ;;  %v726_v51 = vld [vmem:[#allocation4 + $0x1b8] sm:$0xff] }
  0x89   : > { %v1495_v54 = vpack.c.bf16 %v726_v51, %v724_v50 }
  0x8b   : > { %1466 = vmatpush1.bf16.msra.mxu0 %v1465_v56  ;;  %v725_v56 = vld [vmem:[#allocation4 + $0x1b0] sm:$0xff] }
  0x8c   : > { %1468 = vmatprep.subr.bf16.mxu0 %v1467_v57  ;;  %v952_v57 = vld [vmem:[#allocation4 + $0x390] sm:$0xff]  ;;  %v1497_v58 = vpack.c.bf16 %v725_v56, %v723_v55 }
  0x8d   : > { %v1573_v59 = vpack.c.bf16 %v952_v57, %v950_v53 }
  0x8f   : > { %1470 = vmatpush1.bf16.msra.mxu0 %v1469_v62  ;;  %v728_v62 = vld [vmem:[#allocation4 + $0x1c8] sm:$0xff]  ;;  %1574 = vmatpush1.bf16.msra.mxu1 %v1573_v59  ;;  %v651_v59 = vld [vmem:[#allocation6] sm:$0xff] }
  0x90   : > { %1472 = vmatprep.subr.bf16.mxu0 %v1471_v63  ;;  %v730_v63 = vld [vmem:[#allocation4 + $0x1d8] sm:$0xff]  ;;  %1576 = vmatprep.subr.bf16.mxu1 %v1575_v1  ;;  %v655_v1 = vld [vmem:[#allocation6 + $0x20] sm:$0xff] }
  0x91   : > { %v1499_v3 = vpack.c.bf16 %v730_v63, %v728_v62  ;;  %v656_v62 = vld [vmem:[#allocation6 + $0x28] sm:$0xff]  ;;  %v658_v63 = vld [vmem:[#allocation6 + $0x38] sm:$0xff] }
  0x92   : > { %v1511_v9 = vpack.c.bf16 %v658_v63, %v656_v62  ;;  %v1085_v63 = vld [vmem:[#allocation4 + $0x460] sm:$0xff] }
  0x93   : > { %1474 = vmatpush1.bf16.msra.mxu0 %v1473_v5  ;;  %v729_v5 = vld [vmem:[#allocation4 + $0x1d0] sm:$0xff] }
  0x94   : > { %1476 = vmatprep.subr.bf16.mxu0 %v1475_v6  ;;  %v956_v6 = vld [vmem:[#allocation4 + $0x3b0] sm:$0xff]  ;;  %v1501_v7 = vpack.c.bf16 %v729_v5, %v727_v4  ;;  %v1509_v4 = vpack.c.bf16 %v653_v60, %v651_v59 }
  0x95   : > { %v1577_v8 = vpack.c.bf16 %v956_v6, %v954_v2  ;;  %v657_v2 = vld [vmem:[#allocation6 + $0x30] sm:$0xff] }
  0x96   : > { %v1075_v6 = vld [vmem:[#allocation4 + $0x410] sm:$0xff] }
  0x97   : > { %1478 = vmatpush1.bf16.msra.mxu0 %v1477_v11  ;;  %v732_v11 = vld [vmem:[#allocation4 + $0x1e8] sm:$0xff]  ;;  %1578 = vmatpush1.bf16.msra.mxu1 %v1577_v8 }
  0x98   : > { %1480 = vmatprep.subr.bf16.mxu0 %v1479_v12  ;;  %v734_v12 = vld [vmem:[#allocation4 + $0x1f8] sm:$0xff]  ;;  %1580 = vmatprep.subr.bf16.mxu1 %v1579_v13 }
  0x99   : > { %v1503_v14 = vpack.c.bf16 %v734_v12, %v732_v11  ;;  %v1080_v12 = vld [vmem:[#allocation4 + $0x438] sm:$0xff] }
  0x9b   : > { %1482 = vmatpush1.bf16.msra.mxu0 %v1481_v17  ;;  %v958_v17 = vld [vmem:[#allocation4 + $0x3c0] sm:$0xff] }
  0x9c   : > { %1484 = vmatprep.subr.bf16.mxu0 %v1483_v18  ;;  %v1505_v18 = vpack.c.bf16 %v733_v16, %v731_v15  ;;  %v1581_v21 = vpack.c.bf16 %v960_v19, %v958_v17  ;;  %v662_v15 = vld [vmem:[#allocation6 + $0x58] sm:$0xff] }
  0x9e   : > { %1582 = vmatpush1.bf16.msra.mxu1 %v1581_v21 }
  0x9f   : > { %1486 = vmatpush1.bf16.msra.mxu0 %v1485_v24  ;;  %v963_v24 = vld [vmem:[#allocation4 + $0x3e8] sm:$0xff] }
  0xa0   : > { %1488 = vmatprep.subr.bf16.mxu0 %v1487_v25  ;;  %v1507_v25 = vpack.c.bf16 %v654_v23, %v652_v22  ;;  %v1583_v28 = vpack.c.bf16 %v965_v26, %v963_v24  ;;  %v1077_v22 = vld [vmem:[#allocation4 + $0x420] sm:$0xff]  ;;  %v1513_v24 = vpack.c.bf16 %v657_v2, %v655_v1  ;;  %v661_v26 = vld [vmem:[#allocation6 + $0x50] sm:$0xff]  ;;  %v1090_v2 = vld [vmem:[#allocation4 + $0x488] sm:$0xff] }
  0xa1   : > { %v1087_v1 = vld [vmem:[#allocation4 + $0x470] sm:$0xff] }
  0xa2   : > { %1584 = vmatprep.subr.bf16.mxu1 %v1583_v28 }
  0xa3   : > { %1490 = vmatpush1.bf16.msra.mxu0 %v1489_v29  ;;  %v962_v29 = vld [vmem:[#allocation4 + $0x3e0] sm:$0xff] }
  0xa4   : > { %1492 = vmatprep.subr.bf16.mxu0 %v1491_v42  ;;  %v1585_v31 = vpack.c.bf16 %v964_v30, %v962_v29  ;;  %v1079_v30 = vld [vmem:[#allocation4 + $0x430] sm:$0xff] }
  0xa6   : > { %1586 = vmatpush1.bf16.msra.mxu1 %v1585_v31 }
  0xa7   : > { %1494 = vmatpush1.bf16.msra.mxu0 %v1493_v45  ;;  %1588 = vmatprep.subr.bf16.mxu1 %v1587_v34 }
  0xa8   : > { %1496 = vmatprep.subr.bf16.mxu0 %v1495_v54 }
  0xab   : > { %1498 = vmatpush1.bf16.msra.mxu0 %v1497_v58 }
  0xac   : > { %1500 = vmatprep.subr.bf16.mxu0 %v1499_v3  ;;  %v1073_v3 = vld [vmem:[#allocation4 + $0x400] sm:$0xff] }
  0xad   : > { %v1589_v21 = vpack.c.bf16 %v1075_v6, %v1073_v3  ;;  %v1092_v3 = vld [vmem:[#allocation4 + $0x498] sm:$0xff]  ;;  %v1089_v6 = vld [vmem:[#allocation4 + $0x480] sm:$0xff] }
  0xaf   : > { %1502 = vmatpush1.bf16.msra.mxu0 %v1501_v7  ;;  %v1078_v7 = vld [vmem:[#allocation4 + $0x428] sm:$0xff] }
  0xb0   : > { %1504 = vmatprep.subr.bf16.mxu0 %v1503_v14  ;;  %v660_v14 = vld [vmem:[#allocation6 + $0x48] sm:$0xff]  ;;  %v1591_v28 = vpack.c.bf16 %v1080_v12, %v1078_v7  ;;  %v1091_v7 = vld [vmem:[#allocation4 + $0x490] sm:$0xff]  ;;  %v1093_v12 = vld [vmem:[#allocation4 + $0x4a0] sm:$0xff] }
  0xb1   : > { %v1515_v31 = vpack.c.bf16 %v662_v15, %v660_v14  ;;  %v1098_v14 = vld [vmem:[#allocation4 + $0x4c8] sm:$0xff]  ;;  %v1100_v15 = vld [vmem:[#allocation4 + $0x4d8] sm:$0xff] }
  0xb3   : > { %1506 = vmatpush1.bf16.msra.mxu0 %v1505_v18  ;;  %v659_v18 = vld [vmem:[#allocation6 + $0x40] sm:$0xff] }
  0xb4   : > { %1508 = vmatprep.subr.bf16.mxu0 %v1507_v25 }
 0x149   : > { %v585_v42 = vpop.f32.mrb[0].mxu0 }
 0x14a   : > { %v612_v43 = vadd.f32 %v605_v40, %v585_v42  ;;  %v587_v44 = vpop.f32.mrb[1].mxu0  ;;  %v666_v42 = vld [vmem:[#allocation6 + $0x78] sm:$0xff] }
 0x14b   : > { %v613_v45 = vadd.f32 %v609_v41, %v587_v44  ;;  %v1593_v44 = vpack.c.bf16 %v1079_v30, %v1077_v22  ;;  %v1107_v30 = vld [vmem:[#allocation4 + $0x510] sm:$0xff] }
 0x14c   : > { %v616_v46 = vmax.f32 %v612_v43, 0.0 }
 0x14d   : > { %v617_v47 = vmax.f32 %v613_v45, 0.0  ;;  %v591_v48 = vpop.f32.mrb[2].mxu0  ;;  %v1517_v45 = vpack.c.bf16 %v661_v26, %v659_v18  ;;  %v1097_v18 = vld [vmem:[#allocation4 + $0x4c0] sm:$0xff]  ;;  %v1108_v26 = vld [vmem:[#allocation4 + $0x518] sm:$0xff] }
 0x14e   : > { %v631_v49 = vrot.slane %v616_v46, 7  ;;  %v614_v50 = vadd.f32 %v605_v40, %v591_v48  ;;  %v593_v51 = vpop.f32.mrb[3].mxu0 }
 0x14f   : > { %v632_v52 = vrot.slane %v617_v47, 7  ;;  %v615_v53 = vadd.f32 %v609_v41, %v593_v51  ;;  %v664_v41 = vld [vmem:[#allocation6 + $0x68] sm:$0xff]  ;;  %v663_v47 = vld [vmem:[#allocation6 + $0x60] sm:$0xff]  ;;  %v1083_v51 = vld [vmem:[#allocation4 + $0x450] sm:$0xff] }
 0x150   : > { %643 = vst [vmem:[#allocation3] sm:$0xfe] %v631_v49  ;;  %v618_v54 = vmax.f32 %v614_v50, 0.0  ;;  %v1081_v50 = vld [vmem:[#allocation4 + $0x440] sm:$0xff] }
 0x151   : > { %644 = vst [vmem:[#allocation3 + $0x8] sm:$0xfe] %v632_v52  ;;  %v619_v55 = vmax.f32 %v615_v53, 0.0  ;;  %v665_v53 = vld [vmem:[#allocation6 + $0x70] sm:$0xff]  ;;  %v1597_v59 = vpack.c.bf16 %v1083_v51, %v1081_v50  ;;  %v1117_v51 = vld [vmem:[#allocation4 + $0x560] sm:$0xff] }
 0x152   : > { %v633_v56 = vrot.slane %v618_v54, 7  ;;  %v1521_v60 = vpack.c.bf16 %v665_v53, %v663_v47  ;;  %v1120_v47 = vld [vmem:[#allocation4 + $0x578] sm:$0xff]  ;;  %v1122_v53 = vld [vmem:[#allocation4 + $0x588] sm:$0xff] }
 0x153   : > { %v635_v57 = vrot.slane %v619_v55, 7  ;;  %v1086_v55 = vld [vmem:[#allocation4 + $0x468] sm:$0xff] }
 0x154   : > { %v2089_v58 = vsel %vm630_vm2, %v631_v49, %v633_v56  ;;  %647 = vst [vmem:[#allocation3 + $0x20] sm:$0x1] %v633_v56  ;;  %v1595_v49 = vpack.c.bf16 %v1084_v38, %v1082_v35  ;;  %v1088_v56 = vld [vmem:[#allocation4 + $0x478] sm:$0xff]  ;;  %v1109_v35 = vld [vmem:[#allocation4 + $0x520] sm:$0xff]  ;;  %v1111_v38 = vld [vmem:[#allocation4 + $0x530] sm:$0xff] }
 0x155   : > { %v2091_v61 = vsel %vm630_vm2, %v632_v52, %v635_v57  ;;  %648 = vst [vmem:[#allocation3 + $0x28] sm:$0x1] %v635_v57  ;;  %v974_v19 = vrot.slane %v2089_v58, 1  ;;  %v1519_v52 = vpack.c.bf16 %v666_v42, %v664_v41  ;;  %v1599_v62 = vpack.c.bf16 %v1088_v56, %v1086_v55  ;;  %v1116_v41 = vld [vmem:[#allocation4 + $0x558] sm:$0xff] }
 0x156   : > { %v977_v17 = vrot.slane %v2091_v61, 1  ;;  %v1146_v48 = vrot.slane %v2091_v61, 2  ;;  %v1625_v42 = vpack.c.bf16 %v1111_v38, %v1109_v35 }
 0x157   : > { %v895_v5 = vld [vmem:[#allocation3] sm:$0xfe] }
 0x158   : > { %v668_v8 = vld [vmem:[#allocation3 + $0x8] sm:$0xff]  ;;  %v973_v11 = vrot.slane %v895_v5, 1  ;;  %v667_v13 = vld [vmem:[#allocation3] sm:$0xff]  ;;  %v1603_v5 = vpack.c.bf16 %v1092_v3, %v1090_v2  ;;  %v1125_v2 = vld [vmem:[#allocation4 + $0x5a0] sm:$0xff] }
 0x159   : > { %v896_v10 = vld [vmem:[#allocation3 + $0x8] sm:$0xfe]  ;;  %799 = vmatprep.mubr.f32.mxu0 %v668_v8  ;;  %v1094_v8 = vld [vmem:[#allocation4 + $0x4a8] sm:$0xff]  ;;  %v1127_v3 = vld [vmem:[#allocation4 + $0x5b0] sm:$0xff] }
 0x15a   : > { %v976_v16 = vrot.slane %v896_v10, 1  ;;  %800 = vmatmul.mubr.f32.vlgmr.msra.gmra.mrb[4].mxu0 %v667_v13  ;;  %v1069_v23 = vld [vmem:[#allocation3 + $0x8] sm:$0xfc]  ;;  %v975_v32 = vsel %vm972_vm3, %v973_v11, %v974_v19  ;;  %v1605_v10 = vpack.c.bf16 %v1091_v7, %v1089_v6  ;;  %v1095_v13 = vld [vmem:[#allocation4 + $0x4b0] sm:$0xff]  ;;  %v1641_v6 = vpack.c.bf16 %v1127_v3, %v1125_v2 }
 0x15b   : > { %1510 = vmatpush1.bf16.msra.mxu0 %v1509_v4  ;;  %805 = vmatprep.mubr.f32.mxu0 %v2091_v61  ;;  %v899_v29 = vld [vmem:[#allocation3 + $0x20] sm:$0x1]  ;;  %v1145_v43 = vrot.slane %v1069_v23, 2  ;;  %v1601_v4 = vpack.c.bf16 %v1087_v1, %v1085_v63  ;;  %v1101_v23 = vld [vmem:[#allocation4 + $0x4e0] sm:$0xff] }
 0x15c   : > { %v978_v25 = vsel %vm972_vm3, %v976_v16, %v977_v17  ;;  %1512 = vmatprep.subr.bf16.mxu0 %v1511_v9  ;;  %v900_v33 = vld [vmem:[#allocation3 + $0x28] sm:$0x1]  ;;  %v979_v34 = vrot.slane %v899_v29, 1  ;;  %v1609_v16 = vpack.c.bf16 %v1095_v13, %v1093_v12  ;;  %v1105_v29 = vld [vmem:[#allocation4 + $0x500] sm:$0xff] }
 0x15d   : > { %1051 = vmatprep.mubr.f32.mxu1 %v978_v25  ;;  %v981_v40 = vrot.slane %v900_v33, 1  ;;  %v1147_v57 = vsel %vm1141_vm4, %v1145_v43, %v1146_v48  ;;  %v1096_v9 = vld [vmem:[#allocation4 + $0x4b8] sm:$0xff]  ;;  %v1106_v25 = vld [vmem:[#allocation4 + $0x508] sm:$0xff]  ;;  %v1621_v33 = vpack.c.bf16 %v1107_v30, %v1105_v29 }
 0x15e   : > { %1052 = vmatmul.mubr.f32.vlgmr.msra.gmra.mrb[0].mxu1 %v975_v32  ;;  %806 = vmatmul.mubr.f32.gmra.mrb[6].mxu0 %v2089_v58  ;;  %v980_v54 = vsel %vm972_vm3, %v974_v19, %v979_v34  ;;  %v1607_v11 = vpack.c.bf16 %v1096_v9, %v1094_v8  ;;  %v1099_v19 = vld [vmem:[#allocation4 + $0x4d0] sm:$0xff]  ;;  %v1112_v32 = vld [vmem:[#allocation4 + $0x538] sm:$0xff]  ;;  %v1129_v8 = vld [vmem:[#allocation4 + $0x5c0] sm:$0xff] }
 0x15f   : > { %1590 = vmatpush1.bf16.msra.mxu1 %v1589_v21  ;;  %1514 = vmatpush1.bf16.msra.mxu0 %v1513_v24  ;;  %v982_v46 = vsel %vm972_vm3, %v977_v17, %v981_v40  ;;  %v1611_v17 = vpack.c.bf16 %v1100_v15, %v1098_v14  ;;  %v1104_v21 = vld [vmem:[#allocation4 + $0x4f8] sm:$0xff]  ;;  %v1613_v22 = vpack.c.bf16 %v1099_v19, %v1097_v18  ;;  %v1103_v24 = vld [vmem:[#allocation4 + $0x4f0] sm:$0xff]  ;;  %v1114_v40 = vld [vmem:[#allocation4 + $0x548] sm:$0xff] }
 0x160   : > { %1592 = vmatprep.subr.bf16.mxu1 %v1591_v28  ;;  %1516 = vmatprep.subr.bf16.mxu0 %v1515_v31  ;;  %v1617_v28 = vpack.c.bf16 %v1103_v24, %v1101_v23  ;;  %v1110_v31 = vld [vmem:[#allocation4 + $0x528] sm:$0xff]  ;;  %v1627_v43 = vpack.c.bf16 %v1116_v41, %v1114_v40  ;;  %v1131_v9 = vld [vmem:[#allocation4 + $0x5d0] sm:$0xff]  ;;  %v1133_v14 = vld [vmem:[#allocation4 + $0x5e0] sm:$0xff] }
 0x161   : > { %1057 = vmatprep.mubr.f32.mxu1 %v982_v46  ;;  %882 = vmatprep.mubr.f32.mxu0 %v1779_v0  ;;  %v1623_v34 = vpack.c.bf16 %v1112_v32, %v1110_v31  ;;  %v1118_v46 = vld [vmem:[#allocation4 + $0x568] sm:$0xff]  ;;  %v1645_v12 = vpack.c.bf16 %v1131_v9, %v1129_v8  ;;  %v1135_v15 = vld [vmem:[#allocation4 + $0x5f0] sm:$0xff]  ;;  %v1071_v18 = vld [vmem:[#allocation3 + $0x28] sm:$0x3] }
 0x162   : > { %1058 = vmatmul.mubr.f32.gmra.mrb[2].mxu1 %v980_v54  ;;  %v1631_v50 = vpack.c.bf16 %v1120_v47, %v1118_v46  ;;  %v1124_v54 = vld [vmem:[#allocation4 + $0x598] sm:$0xff] }
 0x163   : > { %1594 = vmatpush1.bf16.msra.mxu1 %v1593_v44  ;;  %1220 = vmatprep.mubr.f32.mxu1 %v1147_v57  ;;  %v1113_v44 = vld [vmem:[#allocation4 + $0x540] sm:$0xff]  ;;  %v1635_v56 = vpack.c.bf16 %v1124_v54, %v1122_v53 }
 0x164   : > { %1518 = vmatpush1.bf16.msra.mxu0 %v1517_v45  ;;  %1596 = vmatprep.subr.bf16.mxu1 %v1595_v49  ;;  %v1115_v45 = vld [vmem:[#allocation4 + $0x550] sm:$0xff]  ;;  %v1121_v57 = vld [vmem:[#allocation4 + $0x580] sm:$0xff] }
 0x165   : > { %1520 = vmatprep.subr.bf16.mxu0 %v1519_v52  ;;  %v1629_v49 = vpack.c.bf16 %v1115_v45, %v1113_v44  ;;  %v1119_v52 = vld [vmem:[#allocation4 + $0x570] sm:$0xff] }
 0x166   : > { %v1633_v55 = vpack.c.bf16 %v1119_v52, %v1117_v51 }
 0x167   : > { %1598 = vmatpush1.bf16.msra.mxu1 %v1597_v59  ;;  %v1123_v59 = vld [vmem:[#allocation4 + $0x590] sm:$0xff] }
 0x168   : > { %1522 = vmatpush1.bf16.msra.mxu0 %v1521_v60  ;;  %1600 = vmatprep.subr.bf16.mxu1 %v1599_v62  ;;  %v1126_v60 = vld [vmem:[#allocation4 + $0x5a8] sm:$0xff]  ;;  %v1128_v62 = vld [vmem:[#allocation4 + $0x5b8] sm:$0xff]  ;;  %v1637_v63 = vpack.c.bf16 %v1123_v59, %v1121_v57 }
 0x169   : > { %v1639_v1 = vpack.c.bf16 %v1128_v62, %v1126_v60 }
 0x16b   : > { %1389 = vmatmul.mubr.msk.f32.vlgmr.msra.gmra.mrb[4].mxu0 %vm282_vm0, %v1957_v20  ;;  %1602 = vmatpush1.bf16.msra.mxu1 %v1601_v4  ;;  %v1102_v20 = vld [vmem:[#allocation4 + $0x4e8] sm:$0xff] }
 0x16c   : > { %888 = vmatprep.mubr.f32.mxu0 %v1779_v0  ;;  %1604 = vmatprep.subr.bf16.mxu1 %v1603_v5  ;;  %v1615_v0 = vpack.c.bf16 %v1104_v21, %v1102_v20  ;;  %v1130_v4 = vld [vmem:[#allocation4 + $0x5c8] sm:$0xff]  ;;  %v1132_v5 = vld [vmem:[#allocation4 + $0x5d8] sm:$0xff]  ;;  %v1150_v20 = vrot.slane %v1071_v18, 2  ;;  %v1070_v21 = vld [vmem:[#allocation3 + $0x20] sm:$0x3] }
 0x16d   : > { %v1643_v7 = vpack.c.bf16 %v1132_v5, %v1130_v4  ;;  %v1148_v23 = vrot.slane %v1070_v21, 2 }
 0x16e   : > { %v1151_v24 = vsel %vm1141_vm4, %v1146_v48, %v1150_v20 }
 0x16f   : > { %1390 = vmatmul.mubr.msk.f32.gmra.mrb[6].mxu0 %vm282_vm0, %v1973_v27  ;;  %1606 = vmatpush1.bf16.msra.mxu1 %v1605_v10  ;;  %v1619_v27 = vpack.c.bf16 %v1108_v26, %v1106_v25  ;;  %v1134_v10 = vld [vmem:[#allocation4 + $0x5e8] sm:$0xff] }
 0x170   : > { %1608 = vmatprep.subr.bf16.mxu1 %v1607_v11  ;;  %v1136_v11 = vld [vmem:[#allocation4 + $0x5f8] sm:$0xff] }
 0x171   : > { %v1647_v13 = vpack.c.bf16 %v1136_v11, %v1134_v10 }
 0x173   : > { %1610 = vmatpush1.bf16.msra.mxu1 %v1609_v16  ;;  %v1068_v16 = vld [vmem:[#allocation3] sm:$0xfc] }
 0x174   : > { %1612 = vmatprep.subr.bf16.mxu1 %v1611_v17  ;;  %v1649_v17 = vpack.c.bf16 %v1135_v15, %v1133_v14  ;;  %v1142_v19 = vrot.slane %v1068_v16, 2 }
 0x177   : > { %1614 = vmatpush1.bf16.msra.mxu1 %v1613_v22  ;;  %v1143_v22 = vrot.slane %v2089_v58, 2  ;;  %v1237_v58 = vld [vmem:[%s2136_s5] sm:$0x3] }
 0x178   : > { %1616 = vmatprep.subr.bf16.mxu1 %v1615_v0  ;;  %v1242_v30 = vrot.slane %v1237_v58, %v604_v37  ;;  %v1246_v61 = vrot.slane %v1237_v58, %v608_v39 }
 0x179   : > { %v1144_v0 = vsel %vm1141_vm4, %v1142_v19, %v1143_v22  ;;  %v1149_v25 = vsel %vm1141_vm4, %v1143_v22, %v1148_v23 }
 0x17b   : > { %1618 = vmatpush1.bf16.msra.mxu1 %v1617_v28 }
 0x17c   : > { %1620 = vmatprep.subr.bf16.mxu1 %v1619_v27 }
 0x17f   : > { %1622 = vmatpush1.bf16.msra.mxu1 %v1621_v33 }
 0x180   : > { %1624 = vmatprep.subr.bf16.mxu1 %v1623_v34 }
 0x183   : > { %1626 = vmatpush1.bf16.msra.mxu1 %v1625_v42 }
 0x184   : > { %1628 = vmatprep.subr.bf16.mxu1 %v1627_v43 }
 0x187   : > { %1630 = vmatpush1.bf16.msra.mxu1 %v1629_v49 }
 0x188   : > { %1632 = vmatprep.subr.bf16.mxu1 %v1631_v50 }
 0x18b   : > { %1634 = vmatpush1.bf16.msra.mxu1 %v1633_v55 }
 0x18c   : > { %1636 = vmatprep.subr.bf16.mxu1 %v1635_v56 }
 0x18f   : > { %1638 = vmatpush1.bf16.msra.mxu1 %v1637_v63 }
 0x190   : > { %1640 = vmatprep.subr.bf16.mxu1 %v1639_v1 }
 0x193   : > { %1642 = vmatpush1.bf16.msra.mxu1 %v1641_v6 }
 0x194   : > { %1644 = vmatprep.subr.bf16.mxu1 %v1643_v7 }
 0x197   : > { %1646 = vmatpush1.bf16.msra.mxu1 %v1645_v12 }
 0x198   : > { %1648 = vmatprep.subr.bf16.mxu1 %v1647_v13 }
 0x19b   : > { %1650 = vmatpush1.bf16.msra.mxu1 %v1649_v17 }
 0x19e   : > { %1221 = vmatmul.mubr.f32.vlgmr.msra.gmra.mrb[0].mxu1 %v1144_v0 }
 0x19f   : > { %1226 = vmatprep.mubr.f32.mxu1 %v1151_v24 }
 0x1a2   : > { %1227 = vmatmul.mubr.f32.gmra.mrb[2].mxu1 %v1149_v25 }
 0x23e   : > { %v884_v26 = vpop.f32.mrb[4].mxu0 }
 0x23f   : > { %v886_v28 = vpop.f32.mrb[5].mxu0 }
 0x242   : > { %v890_v27 = vpop.f32.mrb[6].mxu0 }
 0x243   : > { %v892_v29 = vpop.f32.mrb[7].mxu0 }
 0x271   : > { %v1222_v31 = vpop.f32.mrb[0].mxu1 }
 0x272   : > { %v1651_v48 = vadd.f32 %v1222_v31, %v884_v26  ;;  %v1224_v32 = vpop.f32.mrb[1].mxu1 }
 0x273   : > { %v1652_v33 = vadd.f32 %v1224_v32, %v886_v28 }
 0x274   : > { %v1249_v34 = vadd.f32 %v1651_v48, %v1242_v30 }
 0x275   : > { %v1250_v35 = vadd.f32 %v1652_v33, %v1246_v61  ;;  %v1228_v38 = vpop.f32.mrb[2].mxu1 }
 0x276   : > { %v1253_v40 = vmax.f32 %v1249_v34, 0.0  ;;  %v1653_v41 = vadd.f32 %v1228_v38, %v890_v27  ;;  %v1230_v42 = vpop.f32.mrb[3].mxu1 }
 0x277   : > { %v1254_v43 = vmax.f32 %v1250_v35, 0.0  ;;  %v1654_v37 = vadd.f32 %v1230_v42, %v892_v29 }
 0x278   : > { %1257 = vst [vmem:[%s281_s24] sm:$0xff] %v1253_v40  ;;  %v1251_v44 = vadd.f32 %v1653_v41, %v1242_v30 }
 0x279   : > { %1258 = vst [vmem:[%s281_s24 + $0x8] sm:$0xff] %v1254_v43  ;;  %v1252_v36 = vadd.f32 %v1654_v37, %v1246_v61 }
 0x27a   : > { %v1255_v39 = vmax.f32 %v1251_v44, 0.0 }
 0x27b   : > { %v1256_v45 = vmax.f32 %v1252_v36, 0.0 }
 0x27c   : > { %1259 = vst [vmem:[%s281_s24 + $0x10] sm:$0xff] %v1255_v39 }
 0x27d   : > { %1260 = vst [vmem:[%s281_s24 + $0x18] sm:$0xff] %v1256_v45 }
 0x27e PF: > { %s18_s21 = sadd.s32 1, %s1773_s21  }
 0x27f   : > { %p15_p5 = scmp.ge.s32.totalorder %s18_s21, 4  }
 0x281   :  { %17 = sbr.rel (!%p15_p5) target bundleno = 2 (0x2), region = 87 }
 0x288   :  { %1282 = vsyncpa [#allocation5], 1 }
 0x289   :  { %1284 = vsyncpa [#allocation5 + $0x1], 1 }
 0x28a   :  { %1285 = vsyncpa [#allocation7], 1 }

</bundles_post_ra>
